<compile_context>
chip_gen: v5e
topology: v5e:2x2
jax: 0.10.0
libtpu: 0.0.40
codegen_flags: <defaults>
</compile_context>

<pallas_src>
import math

import jax
import jax.numpy as jnp
from jax.experimental import pallas as pl
from jax.experimental.pallas import tpu as pltpu

H1, H2 = 30, 20  # hidden widths fixed by the PyTorch module


def _mlp_kernel(x_ref, w1_ref, b1_ref, w2_ref, b2_ref, w3_ref, b3_ref, o_ref):
    """Fused 3-layer MLP on one features-major batch tile.

    x_ref : (Din, TB)  -- batch on the lane axis (TB multiple of 128)
    wK    : (out, in)  -- PyTorch-native orientation, VMEM-resident
    bK    : (out, 1)   -- f32 column vector, broadcasts over lanes
    o_ref : (Dout, TB) -- lane-dense output store
    """
    xt = x_ref[...]
    # layer 1 + ReLU (f32 MXU accumulation, bias/ReLU on the f32 VPU path)
    h1 = jnp.dot(w1_ref[...], xt, preferred_element_type=jnp.float32) + b1_ref[...]
    h1 = jnp.maximum(h1, 0.0)
    # layer 2 + ReLU
    h2 = (
        jnp.dot(w2_ref[...], h1.astype(w2_ref.dtype),
                preferred_element_type=jnp.float32)
        + b2_ref[...]
    )
    h2 = jnp.maximum(h2, 0.0)
    # layer 3 (logits, no activation)
    o_ref[...] = (
        jnp.dot(w3_ref[...], h2.astype(w3_ref.dtype),
                preferred_element_type=jnp.float32)
        + b3_ref[...]
    ).astype(o_ref.dtype)


def _round_up(n, m):
    return ((n + m - 1) // m) * m


def mlp_forward_features_major(
    x_t,
    params,
    *,
    block_batch=16384,
    dimension_semantics=("parallel",),  # on v7x pass (pltpu.CORE_PARALLEL,)
):
    """Fused MLP via Pallas on features-major activations.

    x_t: (num_inputs, batch) -- batch on the last (lane) axis.
    params: w1 (30,Din), b1 (30,1), w2 (20,30), b2 (20,1), w3 (Dout,20), b3 (Dout,1)
    Returns logits_t: (num_outputs, batch) in x_t.dtype.
    """
    w1, b1 = params["w1"], params["b1"]
    w2, b2 = params["w2"], params["b2"]
    w3, b3 = params["w3"], params["b3"]
    din, batch = x_t.shape
    dout = w3.shape[0]
    dtype = x_t.dtype

    # Stream weights in x's dtype (bf16 streaming only when x is already bf16
    # upstream -- no standalone wrapper cast of x). Biases stay f32.
    if w1.dtype != dtype:
        w1, w2, w3 = (w.astype(dtype) for w in (w1, w2, w3))
    b1, b2, b3 = (b.astype(jnp.float32) for b in (b1, b2, b3))

    # Batch tile: lane axis must be a multiple of 128. Split the batch into
    # ceil(batch / block_batch) tiles of (nearly) equal size so ragged batches
    # pad by at most one 128-row granule per tile instead of a whole tile.
    num_tiles = -(-batch // block_batch)
    tb = _round_up(-(-batch // num_tiles), 128)
    padded = tb * num_tiles
    if padded != batch:
        x_t = jnp.pad(x_t, ((0, 0), (0, padded - batch)))

    flops = 2 * padded * (din * H1 + H1 * H2 + H2 * dout)
    bytes_accessed = (
        padded * din * x_t.dtype.itemsize
        + padded * dout * jnp.dtype(dtype).itemsize
        + sum(int(a.size) * a.dtype.itemsize for a in (w1, b1, w2, b2, w3, b3))
    )

    # Weights/biases: full-array blocks, constant index_map -> DMA'd once and
    # resident in VMEM across all batch tiles.
    def resident(arr):
        return pl.BlockSpec(arr.shape, lambda i: (0, 0))

    out_t = pl.pallas_call(
        _mlp_kernel,
        out_shape=jax.ShapeDtypeStruct((dout, padded), dtype),
        grid=(num_tiles,),
        in_specs=[
            pl.BlockSpec((din, tb), lambda i: (0, i)),  # x streamed per batch tile
            resident(w1), resident(b1),
            resident(w2), resident(b2),
            resident(w3), resident(b3),
        ],
        out_specs=pl.BlockSpec((dout, tb), lambda i: (0, i)),
        compiler_params=pltpu.CompilerParams(
            dimension_semantics=dimension_semantics,
        ),
        cost_estimate=pl.CostEstimate(
            flops=flops, transcendentals=0, bytes_accessed=bytes_accessed
        ),
    )(x_t, w1, b1, w2, b2, w3, b3)

    return out_t[:, :batch] if padded != batch else out_t


def mlp_forward(x, params, **kwargs):
    """PyTorch-parity API: x (batch, num_inputs) -> logits (batch, num_outputs).

    The two boundary transposes cost one extra HBM pass over x / out; keep
    activations features-major upstream (mlp_forward_features_major) to avoid them.
    """
    return mlp_forward_features_major(x.T, params, **kwargs).T


def mlp_reference(x, params):
    """Pure-JAX reference mirroring PyTorch (x @ W.T + b)."""
    h = jnp.maximum(x @ params["w1"].T + params["b1"].T, 0.0)
    h = jnp.maximum(h @ params["w2"].T + params["b2"].T, 0.0)
    return h @ params["w3"].T + params["b3"].T


def init_params(key, num_inputs, num_outputs):
    """Deterministic init mirroring torch.nn.Linear (uniform +/- 1/sqrt(fan_in)).

    Weights stored PyTorch-native (out_features, in_features); biases (out, 1).
    """
    dims = [(num_inputs, H1), (H1, H2), (H2, num_outputs)]
    params = {}
    for idx, (fan_in, fan_out) in enumerate(dims, start=1):
        key, kw, kb = jax.random.split(key, 3)
        bound = 1.0 / math.sqrt(fan_in)
        params[f"w{idx}"] = jax.random.uniform(
            kw, (fan_out, fan_in), jnp.float32, minval=-bound, maxval=bound
        )
        params[f"b{idx}"] = jax.random.uniform(
            kb, (fan_out, 1), jnp.float32, minval=-bound, maxval=bound
        )
    return params


if __name__ == "__main__":
    num_inputs = 32
    num_outputs = 10
    batch = 8

    key = jax.random.PRNGKey(0)
    key, kx = jax.random.split(key)
    x = jax.random.normal(kx, (batch, num_inputs), jnp.float32)
    params = init_params(key, num_inputs, num_outputs)

    # PyTorch-semantics path (batch-major in/out).
    logits = jax.block_until_ready(mlp_forward(x, params))
    ref = mlp_reference(x, params)
    assert logits.shape == (batch, num_outputs)
    assert jnp.allclose(logits, ref, atol=1e-5, rtol=1e-5), "mismatch vs reference"

    # Multi-tile + ragged-batch path via the zero-transpose features-major entry.
    key, kx2 = jax.random.split(key)
    x_big = jax.random.normal(kx2, (300, num_inputs), jnp.float32)
    out_big = jax.block_until_ready(
        mlp_forward_features_major(x_big.T, params, block_batch=256)
    ).T
    assert jnp.allclose(out_big, mlp_reference(x_big, params), atol=1e-5, rtol=1e-5)

    print("KERNEL_OK")
</pallas_src>

<mosaic_0001>
module attributes {stable_mosaic.version = 11 : i64} {
  func.func @_mlp_kernel(%arg0: i32, %arg1: memref<32x128xf32, #tpu.memory_space<vmem>>, %arg2: memref<30x32xf32, #tpu.memory_space<vmem>>, %arg3: memref<30x1xf32, #tpu.memory_space<vmem>>, %arg4: memref<20x30xf32, #tpu.memory_space<vmem>>, %arg5: memref<20x1xf32, #tpu.memory_space<vmem>>, %arg6: memref<10x20xf32, #tpu.memory_space<vmem>>, %arg7: memref<10x1xf32, #tpu.memory_space<vmem>>, %arg8: memref<10x128xf32, #tpu.memory_space<vmem>>) attributes {dimension_semantics = [#tpu.dimension_semantics<parallel>], iteration_bounds = array<i64: 1>, scalar_prefetch = 0 : i64, scratch_operands = 0 : i64, tpu.core_type = #tpu.core_type<tc>, window_params = [{transform_indices = @transform_0, window_bounds = array<i64: 32, 128>}, {pipeline_mode = #tpu.pipeline_mode<synchronous>, transform_indices = @transform_1, window_bounds = array<i64: 30, 32>}, {pipeline_mode = #tpu.pipeline_mode<synchronous>, transform_indices = @transform_2, window_bounds = array<i64: 30, 1>}, {pipeline_mode = #tpu.pipeline_mode<synchronous>, transform_indices = @transform_3, window_bounds = array<i64: 20, 30>}, {pipeline_mode = #tpu.pipeline_mode<synchronous>, transform_indices = @transform_4, window_bounds = array<i64: 20, 1>}, {pipeline_mode = #tpu.pipeline_mode<synchronous>, transform_indices = @transform_5, window_bounds = array<i64: 10, 20>}, {pipeline_mode = #tpu.pipeline_mode<synchronous>, transform_indices = @transform_6, window_bounds = array<i64: 10, 1>}, {transform_indices = @transform_7, window_bounds = array<i64: 10, 128>}]} {
    %c0 = arith.constant 0 : index
    %c0_0 = arith.constant 0 : index
    %0 = vector.load %arg1[%c0, %c0_0] : memref<32x128xf32, #tpu.memory_space<vmem>>, vector<32x128xf32>
    %c0_1 = arith.constant 0 : index
    %c0_2 = arith.constant 0 : index
    %1 = vector.load %arg2[%c0_1, %c0_2] : memref<30x32xf32, #tpu.memory_space<vmem>>, vector<30x32xf32>
    %cst = arith.constant dense<0.000000e+00> : vector<30x128xf32>
    %2 = tpu.matmul %1, %0, %cst {dimension_numbers = #tpu.dot_dimension_numbers<[1], [0], [0], [1], [0, 0, 1, 1], [], []>} : vector<30x32xf32>, vector<32x128xf32>, vector<30x128xf32> -> vector<30x128xf32>
    %c0_3 = arith.constant 0 : index
    %c0_4 = arith.constant 0 : index
    %3 = vector.load %arg3[%c0_3, %c0_4] : memref<30x1xf32, #tpu.memory_space<vmem>>, vector<30x1xf32>
    %4 = vector.broadcast %3 : vector<30x1xf32> to vector<30x128xf32>
    %5 = arith.addf %2, %4 : vector<30x128xf32>
    %cst_5 = arith.constant 0.000000e+00 : f32
    %6 = vector.broadcast %cst_5 : f32 to vector<30x128xf32>
    %7 = arith.maximumf %5, %6 : vector<30x128xf32>
    %c0_6 = arith.constant 0 : index
    %c0_7 = arith.constant 0 : index
    %8 = vector.load %arg4[%c0_6, %c0_7] : memref<20x30xf32, #tpu.memory_space<vmem>>, vector<20x30xf32>
    %cst_8 = arith.constant dense<0.000000e+00> : vector<20x128xf32>
    %9 = tpu.matmul %8, %7, %cst_8 {dimension_numbers = #tpu.dot_dimension_numbers<[1], [0], [0], [1], [0, 0, 1, 1], [], []>} : vector<20x30xf32>, vector<30x128xf32>, vector<20x128xf32> -> vector<20x128xf32>
    %c0_9 = arith.constant 0 : index
    %c0_10 = arith.constant 0 : index
    %10 = vector.load %arg5[%c0_9, %c0_10] : memref<20x1xf32, #tpu.memory_space<vmem>>, vector<20x1xf32>
    %11 = vector.broadcast %10 : vector<20x1xf32> to vector<20x128xf32>
    %12 = arith.addf %9, %11 : vector<20x128xf32>
    %cst_11 = arith.constant 0.000000e+00 : f32
    %13 = vector.broadcast %cst_11 : f32 to vector<20x128xf32>
    %14 = arith.maximumf %12, %13 : vector<20x128xf32>
    %c0_12 = arith.constant 0 : index
    %c0_13 = arith.constant 0 : index
    %15 = vector.load %arg6[%c0_12, %c0_13] : memref<10x20xf32, #tpu.memory_space<vmem>>, vector<10x20xf32>
    %cst_14 = arith.constant dense<0.000000e+00> : vector<10x128xf32>
    %16 = tpu.matmul %15, %14, %cst_14 {dimension_numbers = #tpu.dot_dimension_numbers<[1], [0], [0], [1], [0, 0, 1, 1], [], []>} : vector<10x20xf32>, vector<20x128xf32>, vector<10x128xf32> -> vector<10x128xf32>
    %c0_15 = arith.constant 0 : index
    %c0_16 = arith.constant 0 : index
    %17 = vector.load %arg7[%c0_15, %c0_16] : memref<10x1xf32, #tpu.memory_space<vmem>>, vector<10x1xf32>
    %18 = vector.broadcast %17 : vector<10x1xf32> to vector<10x128xf32>
    %19 = arith.addf %16, %18 : vector<10x128xf32>
    %c0_17 = arith.constant 0 : index
    %c0_18 = arith.constant 0 : index
    %20 = vector.load %arg8[%c0_17, %c0_18] : memref<10x128xf32, #tpu.memory_space<vmem>>, vector<10x128xf32>
    tpu.vector_store %arg8[%c0_17, %c0_18], %19 {strides = array<i32>} : memref<10x128xf32, #tpu.memory_space<vmem>>, vector<10x128xf32>,
    return
  }
  func.func @transform_0(%arg0: i32) -> (i32, i32) {
    %c0_i32 = arith.constant 0 : i32
    %c0_i32_0 = arith.constant 0 : i32
    return %c0_i32, %arg0 : i32, i32
  }
  func.func @transform_1(%arg0: i32) -> (i32, i32) {
    %c0_i32 = arith.constant 0 : i32
    %c0_i32_0 = arith.constant 0 : i32
    %c0_i32_1 = arith.constant 0 : i32
    return %c0_i32, %c0_i32_0 : i32, i32
  }
  func.func @transform_2(%arg0: i32) -> (i32, i32) {
    %c0_i32 = arith.constant 0 : i32
    %c0_i32_0 = arith.constant 0 : i32
    %c0_i32_1 = arith.constant 0 : i32
    return %c0_i32, %c0_i32_0 : i32, i32
  }
  func.func @transform_3(%arg0: i32) -> (i32, i32) {
    %c0_i32 = arith.constant 0 : i32
    %c0_i32_0 = arith.constant 0 : i32
    %c0_i32_1 = arith.constant 0 : i32
    return %c0_i32, %c0_i32_0 : i32, i32
  }
  func.func @transform_4(%arg0: i32) -> (i32, i32) {
    %c0_i32 = arith.constant 0 : i32
    %c0_i32_0 = arith.constant 0 : i32
    %c0_i32_1 = arith.constant 0 : i32
    return %c0_i32, %c0_i32_0 : i32, i32
  }
  func.func @transform_5(%arg0: i32) -> (i32, i32) {
    %c0_i32 = arith.constant 0 : i32
    %c0_i32_0 = arith.constant 0 : i32
    %c0_i32_1 = arith.constant 0 : i32
    return %c0_i32, %c0_i32_0 : i32, i32
  }
  func.func @transform_6(%arg0: i32) -> (i32, i32) {
    %c0_i32 = arith.constant 0 : i32
    %c0_i32_0 = arith.constant 0 : i32
    %c0_i32_1 = arith.constant 0 : i32
    return %c0_i32, %c0_i32_0 : i32, i32
  }
  func.func @transform_7(%arg0: i32) -> (i32, i32) {
    %c0_i32 = arith.constant 0 : i32
    %c0_i32_0 = arith.constant 0 : i32
    return %c0_i32, %arg0 : i32, i32
  }
}

</mosaic_0001>

<bundles_post_ra>
// kernel: tpu_custom_call.1
= control target key start
LH: loop header
LB: loop body
LE: loop exit
PB: predicated region body
PF: predicated region fallthrough
CT: control target
= control target key end

     0   :  { %12 = vsyncpa [#allocation3], 0  ;;  %s492_s0 = inlined_call_operand.vmem [shape: f32[32,128], index: 0, kind: input, shape index: {}]   ;;  %s493_s1 = inlined_call_operand.vmem [shape: f32[30,32], index: 1, kind: input, shape index: {}]   ;;  %s494_s2 = inlined_call_operand.vmem [shape: f32[30,1], index: 2, kind: input, shape index: {}]   ;;  %s495_s3 = inlined_call_operand.hbm [shape: f32[20,30], index: 3, kind: input, shape index: {}]   ;;  %s496_s4 = inlined_call_operand.vmem [shape: f32[20,1], index: 4, kind: input, shape index: {}]   ;;  %s497_s5 = inlined_call_operand.hbm [shape: f32[10,20], index: 5, kind: input, shape index: {}]   ;;  %s498_s6 = inlined_call_operand.vmem [shape: f32[10,1], index: 6, kind: input, shape index: {}]   ;;  %s499_s7 = inlined_call_operand.hbm [shape: f32[10,128], index: 7, kind: output, shape index: {}]  }
   0x1   :  { %13 = vsyncpa [#allocation6], 0 }
   0x2   :  { %14 = vsyncpa [#allocation4], 0  ;;  %s25_s26 = sshll.u32 %s495_s3, 4  ;;  %s373_s27 = smov [#allocation2]   ;;  %s26_s26 = int_to_ptr.hbm [resolvable:$true] %s25_s26 }
   0x3   :  { %s27_s28 = sshll.u32 %s373_s27, 4  ;;  %s40_s8 = sshll.u32 %s497_s5, 4  ;;  %s28_s28 = int_to_ptr.vmem [resolvable:$true] %s27_s28  ;;  %s41_s8 = int_to_ptr.hbm [resolvable:$true] %s40_s8 }
   0x4   :  { %s374_s9 = smov 128   ;;  %s375_s10 = smov 8  }
   0x5   :  { %33 = dma.hbm_to_vmem [thread:$0]  %s26_s26, 384, %s28_s28, [#allocation3], %s374_s9, %s374_s9, %s375_s10  }
   0x6   :  { %s376_s11 = smov [#allocation5]  }
   0x7   :  { %s42_s12 = sshll.u32 %s376_s11, 4  ;;  %s43_s12 = int_to_ptr.vmem [resolvable:$true] %s42_s12 }
   0x8   :  { %48 = dma.hbm_to_vmem [thread:$0]  %s41_s8, 256, %s43_s12, [#allocation6], %s374_s9, %s374_s9, %s375_s10  }
   0x9   :  { %367 = dma.done.wait [#allocation3], 384  }
   0xa   :  { %368 = vsyncadd [#allocation3], 4294966912 }
   0xb   :  { %369 = dma.done.wait [#allocation6], 256  }
   0xc   :  { %370 = vsyncadd [#allocation6], 4294967040  ;;  %v377_v0 = vmov 0   ;;  %v62_v1 = vld [vmem:[%s492_s0 + $0x18] sm:$0xff]  ;;  %v61_v2 = vld [vmem:[%s492_s0 + $0x10] sm:$0xff]  ;;  %vm91_vm0 = vcmask 261120  }
   0xd   :  { %292 = vset.pattern.permute.xlu0 %v377_v0  ;;  %293 = vset.pattern.permute.xlu1 %v377_v0  ;;  %v60_v3 = vld [vmem:[%s492_s0 + $0x8] sm:$0xff]  ;;  %v70_v4 = vld [vmem:[%s494_s2 + $0x18] sm:$0x3f]  ;;  %v59_v6 = vld [vmem:[%s492_s0] sm:$0xff]  ;;  %vm168_vm1 = vcmask 1045504   ;;  %vm158_vm2 = vcmask 244736  }
   0xe   :  { %294 = vset.pattern.permute.xlu2 %v377_v0  ;;  %282 = vmatpush.msra.mxu3 %v62_v1  ;;  %v68_v5 = vld [vmem:[%s494_s2 + $0x8] sm:$0xff]  ;;  %v63_v8 = vld [vmem:[%s493_s1] sm:$0xff]  ;;  %v69_v9 = vld [vmem:[%s494_s2 + $0x10] sm:$0xff]  ;;  %vm222_vm3 = vcmask 1043456   ;;  %vm215_vm4 = vcmask 162816   ;;  %s257_s21 = sshll.u32 %s499_s7, 4  ;;  %s258_s21 = int_to_ptr.hbm [resolvable:$true] %s257_s21 }
   0xf   :  { %116 = vmatpush.msra.mxu0 %v62_v1  ;;  %88 = vperm.xlu0 %292, %v70_v4   ;;  %v64_v7 = vld [vmem:[%s493_s1 + $0x8] sm:$0xff]  ;;  %v67_v10 = vld [vmem:[%s494_s2] sm:$0xff]  ;;  %v65_v11 = vld [vmem:[%s493_s1 + $0x10] sm:$0xff] }
  0x10   :  { %283 = vmatpush.msra.mxu3 %v61_v2  ;;  %78 = vperm.xlu1 %293, %v68_v5   ;;  %v140_v12 = vld [vmem:[%s496_s4] sm:$0xff]  ;;  %v66_v14 = vld [vmem:[%s493_s1 + $0x18] sm:$0x3f]  ;;  %v142_v19 = vld [vmem:[%s496_s4 + $0x10] sm:$0xf] }
  0x11   :  { %117 = vmatpush.msra.mxu0 %v61_v2  ;;  %v203_v13 = vld [vmem:[%s498_s6] sm:$0xff]  ;;  %155 = vperm.xlu2 %294, %v142_v19   ;;  %v141_v25 = vld [vmem:[%s496_s4 + $0x8] sm:$0xff]  ;;  %v139_v36 = vld [vmem:[#allocation2 + $0x10] sm:$0xf]  ;;  %s378_s4 = smov [#allocation7]  }
  0x12   :  { %284 = vmatpush.msra.mxu3 %v60_v3  ;;  %v137_v33 = vld [vmem:[#allocation2] sm:$0xff]  ;;  %v204_v34 = vld [vmem:[%s498_s6 + $0x8] sm:$0x3]  ;;  %v201_v49 = vld [vmem:[#allocation5] sm:$0xff]  ;;  %s255_s6 = sshll.u32 %s378_s4, 4  ;;  %s256_s6 = int_to_ptr.vmem [resolvable:$true] %s255_s6 }
  0x13   :  { %118 = vmatpush.msra.mxu0 %v60_v3  ;;  %v138_v35 = vld [vmem:[#allocation2 + $0x8] sm:$0xff]  ;;  %v202_v50 = vld [vmem:[#allocation5 + $0x8] sm:$0x3] }
  0x14   :  { %285 = vmatpush.msra.mxu3 %v59_v6 }
  0x15   :  { %272 = vmatmul.msk.f32.vlgmr.msra.gmra.mxu3 %vm91_vm0, %v64_v7  ;;  %119 = vmatpush.msra.mxu0 %v59_v6 }
  0x16   :  { %271 = vmatmul.msk.f32.vlgmr.msra.gmra.mxu0 %vm91_vm0, %v63_v8 }
  0x17   :  { %83 = vperm.xlu0 %292, %v69_v9  }
  0x18   :  { %73 = vperm.xlu1 %293, %v67_v10  }
  0x19   :  { %150 = vperm.xlu2 %294, %v141_v25  }
  0x1d   :  { %273 = vmatmul.msk.f32.gmra.mxu3 %vm91_vm0, %v65_v11 }
  0x1f   :  { %145 = vperm.xlu0 %292, %v140_v12  }
  0x20   :  { %207 = vperm.xlu1 %293, %v203_v13  }
  0x21   :  { %212 = vperm.xlu2 %294, %v204_v34  }
  0x25   :  { %274 = vmatmul.msk.f32.gmra.mxu3 %vm91_vm0, %v66_v14 }
  0x6b   :  { %v156_v38 = vpop.permute.xlu2 %155 }
  0x73   :  { %v151_v40 = vpop.permute.xlu2 %150 }
  0x7b   :  { %v213_v54 = vpop.permute.xlu2 %212 }
  0x81   :  { %v89_v16 = vpop.permute.xlu0 %88 }
  0x82   :  { %v79_v18 = vpop.permute.xlu1 %78 }
  0x89   :  { %v84_v20 = vpop.permute.xlu0 %83 }
  0x8a   :  { %v74_v28 = vpop.permute.xlu1 %73 }
  0x91   :  { %v146_v44 = vpop.permute.xlu0 %145 }
  0x92   :  { %v208_v51 = vpop.permute.xlu1 %207 }
  0x93   :  { %v121_v24 = vpop.f32.mrf.mxu0 }
  0x94   :  { %v122_v30 = vadd.f32 %v121_v24, %v74_v28 }
  0x96   :  { %v133_v32 = vmax.f32 %v122_v30, 0.0 }
  0x98   :  { %v124_v15 = vpop.f32.mrf.mxu3 }
  0x99   :  { %v125_v26 = vadd.f32 %v124_v15, %v79_v18 }
  0x9b   :  { %v134_v31 = vmax.f32 %v125_v26, 0.0 }
  0xa0   :  { %v127_v17 = vpop.f32.mrf.mxu3 }
  0xa1   :  { %v128_v22 = vadd.f32 %v127_v17, %v84_v20 }
  0xa3   :  { %v135_v29 = vmax.f32 %v128_v22, 0.0 }
  0xa8   :  { %v130_v21 = vpop.f32.mrf.mxu3 }
  0xa9   :  { %v131_v23 = vadd.f32 %v130_v21, %v89_v16 }
  0xab   :  { %v136_v27 = vmax.f32 %v131_v23, 0.0 }
  0xad   :  { %275 = vmatpush.msk.msra.mxu1 %vm168_vm1, %v136_v27 }
  0xaf   :  { %185 = vmatpush.msra.mxu1 %v135_v29 }
  0xb1   :  { %186 = vmatpush.msra.mxu1 %v134_v31 }
  0xb3   :  { %187 = vmatpush.msra.mxu1 %v133_v32 }
  0xb4   :  { %276 = vmatmul.msk.f32.vlgmr.msra.gmra.mxu1 %vm158_vm2, %v137_v33 }
  0xbc   :  { %277 = vmatmul.msk.f32.gmra.mxu1 %vm158_vm2, %v138_v35 }
  0xc4   :  { %278 = vmatmul.msk.f32.gmra.mxu1 %vm158_vm2, %v139_v36 }
 0x131   :  { %v189_v37 = vpop.f32.mrf.mxu1 }
 0x132   :  { %v190_v45 = vadd.f32 %v189_v37, %v146_v44 }
 0x134   :  { %v198_v48 = vmax.f32 %v190_v45, 0.0 }
 0x139   :  { %v192_v39 = vpop.f32.mrf.mxu1 }
 0x13a   :  { %v193_v42 = vadd.f32 %v192_v39, %v151_v40 }
 0x13c   :  { %v199_v47 = vmax.f32 %v193_v42, 0.0 }
 0x141   :  { %v195_v41 = vpop.f32.mrf.mxu1 }
 0x142   :  { %v196_v43 = vadd.f32 %v195_v41, %v156_v38 }
 0x144   :  { %v200_v46 = vmax.f32 %v196_v43, 0.0 }
 0x146   :  { %279 = vmatpush.msk.msra.mxu2 %vm222_vm3, %v200_v46 }
 0x148   :  { %240 = vmatpush.msra.mxu2 %v199_v47 }
 0x14a   :  { %241 = vmatpush.msra.mxu2 %v198_v48 }
 0x14b   :  { %280 = vmatmul.msk.f32.vlgmr.msra.gmra.mxu2 %vm215_vm4, %v201_v49 }
 0x153   :  { %281 = vmatmul.msk.f32.gmra.mxu2 %vm215_vm4, %v202_v50 }
 0x1ce   :  { %v243_v52 = vpop.f32.mrf.mxu2 }
 0x1cf   :  { %v244_v53 = vadd.f32 %v243_v52, %v208_v51 }
 0x1d1   :  { %249 = vst [vmem:[#allocation7] sm:$0xff] %v244_v53 }
 0x1d6   :  { %v246_v55 = vpop.f32.mrf.mxu2 }
 0x1d7   :  { %v247_v56 = vadd.f32 %v246_v55, %v213_v54 }
 0x1d9   :  { %250 = vst [vmem:[#allocation7 + $0x8] sm:$0x3] %v247_v56 }
 0x1da   :  { %263 = dma.vmem_to_hbm [thread:$0]  %s256_s6, 256, %s258_s21, [#allocation4], %s374_s9, %s374_s9, %s375_s10  }
 0x1db   :  { %371 = dma.done.wait [#allocation4], 256  }
 0x1dc   :  { %372 = vsyncadd [#allocation4], 4294967040 }
 0x1dd   :  { %268 = vsyncpa [#allocation3], 1 }
 0x1de   :  { %269 = vsyncpa [#allocation6], 1 }
 0x1df   :  { %270 = vsyncpa [#allocation4], 1 }

</bundles_post_ra>
